<compile_context>
chip_gen: v7x
topology: tpu7x:2x2x1
jax: 0.10.0
libtpu: 0.0.40
codegen_flags: <defaults>
</compile_context>

<pallas_src>
import functools

import jax
import jax.numpy as jnp
from jax.experimental import pallas as pl
from jax.experimental.pallas import tpu as pltpu


def _round_up(n, m):
    return ((n + m - 1) // m) * m


def _cdiv(a, b):
    return -(-a // b)


def dnn_kernel(x_ref, w1_ref, b1_ref, w2_ref, b2_ref, w3_ref, b3_ref, o_ref):
    # fc1 + ReLU: bf16 operands on the MXU, f32 accumulate, f32 epilogue.
    x = x_ref[...].astype(w1_ref.dtype)
    h1 = jnp.dot(x, w1_ref[...], preferred_element_type=jnp.float32)
    h1 = jnp.maximum(h1 + b1_ref[...], 0.0)
    # fc2 + ReLU
    h2 = jnp.dot(h1.astype(w2_ref.dtype), w2_ref[...],
                 preferred_element_type=jnp.float32)
    h2 = jnp.maximum(h2 + b2_ref[...], 0.0)
    # fc3
    out = jnp.dot(h2.astype(w3_ref.dtype), w3_ref[...],
                  preferred_element_type=jnp.float32) + b3_ref[...]
    o_ref[...] = out.astype(o_ref.dtype)


def prepare_params(w1, b1, w2, b2, w3, b3, compute_dtype=jnp.bfloat16):
    """One-time parameter prep (hoisted out of the forward path).

    Weights (already (in, out)) are cast to the MXU compute dtype; biases are
    cast to f32 rows of shape (1, out).
    """
    f32 = jnp.float32
    return (
        w1.astype(compute_dtype), jnp.asarray(b1, f32).reshape(1, -1),
        w2.astype(compute_dtype), jnp.asarray(b2, f32).reshape(1, -1),
        w3.astype(compute_dtype), jnp.asarray(b3, f32).reshape(1, -1),
    )


def _choose_batch_tiling(B, block_b):
    """Pick (tb, Bp): tb multiple of 8, >=2 tiles when B allows (v7x megacore),
    and Bp padded by at most 8 rows above B (no tile-sized waste)."""
    B8 = _round_up(max(B, 1), 8)
    tb = min(_round_up(block_b, 8), B8)
    n_tiles = max(1, _cdiv(B8, tb))
    if n_tiles == 1 and B8 >= 16:
        n_tiles = 2  # use both TensorCores on v7x via "parallel" batch axis
    tb = _round_up(_cdiv(B8, n_tiles), 8)
    Bp = _round_up(B8, tb)
    return tb, Bp


def dnn_forward(x, params, *, block_b=512):
    """Fused 3-layer MLP forward. x: (B, in). params from prepare_params()."""
    w1, b1, w2, b2, w3, b3 = params
    B, in_size = x.shape
    hid1 = w1.shape[1]
    hid2 = w2.shape[1]
    out_size = w3.shape[1]
    out_dtype = x.dtype

    tb, Bp = _choose_batch_tiling(B, block_b)
    n_tiles = Bp // tb

    # Pad only the batch axis (by < tb rows, usually <= 8). Padded rows are
    # sliced off below; no feature padding anywhere.
    if Bp != B:
        xp = jnp.zeros((Bp, in_size), x.dtype).at[:B].set(x)
    else:
        xp = x

    itemsize = lambda a: jnp.dtype(a.dtype).itemsize
    # VMEM footprint: double-buffered x/out tiles + (default double-buffered)
    # weights/biases + intermediates. Capped well under v7x's 64 MiB physical.
    footprint = (
        2 * tb * in_size * itemsize(xp)
        + 2 * tb * out_size * jnp.dtype(out_dtype).itemsize
        + 2 * (w1.size + w2.size + w3.size) * itemsize(w1)
        + 2 * (b1.size + b2.size + b3.size) * 4
        + 2 * tb * max(hid1, hid2) * 4
    )
    vmem_limit = int(min(40 << 20, max(16 << 20, 2 * footprint)))

    flops = 2 * Bp * (in_size * hid1 + hid1 * hid2 + hid2 * out_size)
    bytes_accessed = (
        Bp * in_size * itemsize(xp)
        + Bp * out_size * jnp.dtype(out_dtype).itemsize
        + (w1.size + w2.size + w3.size) * itemsize(w1)
        + (b1.size + b2.size + b3.size) * 4
    )

    # Weights/biases: full-extent blocks, constant index_map -> loaded once and
    # VMEM-resident across all batch tiles.
    # NOTE: at larger hidden dims, add pipeline_mode=pl.Buffered(1) here to
    # drop the (pointless) second pipeline buffer for resident weights.
    resident = lambda arr: pl.BlockSpec(arr.shape, lambda i: (0, 0))

    out_padded = pl.pallas_call(
        dnn_kernel,
        out_shape=jax.ShapeDtypeStruct((Bp, out_size), out_dtype),
        grid=(n_tiles,),
        in_specs=[
            pl.BlockSpec((tb, in_size), lambda i: (i, 0)),
            resident(w1), resident(b1),
            resident(w2), resident(b2),
            resident(w3), resident(b3),
        ],
        out_specs=pl.BlockSpec((tb, out_size), lambda i: (i, 0)),
        compiler_params=pltpu.CompilerParams(
            dimension_semantics=("parallel",),  # batch tiles shard over TCs (v7x)
            vmem_limit_bytes=vmem_limit,
        ),
        cost_estimate=pl.CostEstimate(
            flops=flops, transcendentals=0, bytes_accessed=bytes_accessed),
    )(xp, w1, b1, w2, b2, w3, b3)

    return out_padded[:B] if Bp != B else out_padded


def init_linear(key, in_features, out_features, dtype=jnp.float32):
    # Matches torch.nn.Linear default init: U(-1/sqrt(in), 1/sqrt(in)).
    kw, kb = jax.random.split(key)
    bound = 1.0 / jnp.sqrt(jnp.float32(in_features))
    w = jax.random.uniform(kw, (in_features, out_features), dtype, -bound, bound)
    b = jax.random.uniform(kb, (1, out_features), dtype, -bound, bound)
    return w, b


def _ref_forward(x, w1, b1, w2, b2, w3, b3, dtype):
    def lin(h, w, b):
        return jnp.dot(h.astype(dtype), w.astype(dtype),
                       preferred_element_type=jnp.float32) + b.astype(jnp.float32)
    h = jnp.maximum(lin(x, w1, b1), 0.0)
    h = jnp.maximum(lin(h, w2, b2), 0.0)
    return lin(h, w3, b3)


if __name__ == "__main__":
    input_size, hidden_size, output_size = 32, 64, 16
    batch = 512  # exercises a multi-tile batch grid

    key = jax.random.PRNGKey(0)
    kx, k1, k2, k3 = jax.random.split(key, 4)

    x = jax.random.normal(kx, (batch, input_size), jnp.float32)
    w1, b1 = init_linear(k1, input_size, hidden_size)
    w2, b2 = init_linear(k2, hidden_size, hidden_size)
    w3, b3 = init_linear(k3, hidden_size, output_size)

    # One-time parameter prep (hoisted out of the per-call path) + jitted fwd.
    params = jax.block_until_ready(prepare_params(w1, b1, w2, b2, w3, b3))
    fwd = jax.jit(functools.partial(dnn_forward, block_b=256))

    out = jax.block_until_ready(fwd(x, params))
    assert out.shape == (batch, output_size)

    # Numerical-fidelity check vs a reference using the same bf16 matmul dtype.
    ref_bf16 = _ref_forward(x, w1, b1, w2, b2, w3, b3, jnp.bfloat16)
    assert jnp.allclose(out, ref_bf16, atol=1e-2, rtol=1e-2), \
        float(jnp.max(jnp.abs(out - ref_bf16)))

    # Semantics check vs the full-f32 PyTorch-equivalent forward.
    ref_f32 = _ref_forward(x, w1, b1, w2, b2, w3, b3, jnp.float32)
    assert jnp.allclose(out, ref_f32, atol=5e-2, rtol=5e-2), \
        float(jnp.max(jnp.abs(out - ref_f32)))

    # Ragged-batch path: B not a multiple of the tile -> padded by <= 8 rows.
    xr = x[:300]
    out_r = jax.block_until_ready(fwd(xr, params))
    ref_r = _ref_forward(xr, w1, b1, w2, b2, w3, b3, jnp.float32)
    assert out_r.shape == (300, output_size)
    assert jnp.allclose(out_r, ref_r, atol=5e-2, rtol=5e-2), \
        float(jnp.max(jnp.abs(out_r - ref_r)))

    print("KERNEL_OK")
</pallas_src>

<mosaic_0001>
module attributes {stable_mosaic.version = 11 : i64} {
  func.func @dnn_kernel(%arg0: i32, %arg1: memref<256x32xf32, #tpu.memory_space<vmem>>, %arg2: memref<32x64xbf16, #tpu.memory_space<vmem>>, %arg3: memref<1x64xf32, #tpu.memory_space<vmem>>, %arg4: memref<64x64xbf16, #tpu.memory_space<vmem>>, %arg5: memref<1x64xf32, #tpu.memory_space<vmem>>, %arg6: memref<64x16xbf16, #tpu.memory_space<vmem>>, %arg7: memref<1x16xf32, #tpu.memory_space<vmem>>, %arg8: memref<256x16xf32, #tpu.memory_space<vmem>>) attributes {dimension_semantics = [#tpu.dimension_semantics<parallel>], iteration_bounds = array<i64: 2>, scalar_prefetch = 0 : i64, scratch_operands = 0 : i64, tpu.core_type = #tpu.core_type<tc>, window_params = [{transform_indices = @transform_0, window_bounds = array<i64: 256, 32>}, {pipeline_mode = #tpu.pipeline_mode<synchronous>, transform_indices = @transform_1, window_bounds = array<i64: 32, 64>}, {pipeline_mode = #tpu.pipeline_mode<synchronous>, transform_indices = @transform_2, window_bounds = array<i64: 1, 64>}, {pipeline_mode = #tpu.pipeline_mode<synchronous>, transform_indices = @transform_3, window_bounds = array<i64: 64, 64>}, {pipeline_mode = #tpu.pipeline_mode<synchronous>, transform_indices = @transform_4, window_bounds = array<i64: 1, 64>}, {pipeline_mode = #tpu.pipeline_mode<synchronous>, transform_indices = @transform_5, window_bounds = array<i64: 64, 16>}, {pipeline_mode = #tpu.pipeline_mode<synchronous>, transform_indices = @transform_6, window_bounds = array<i64: 1, 16>}, {transform_indices = @transform_7, window_bounds = array<i64: 256, 16>}]} {
    %c0 = arith.constant 0 : index
    %c0_0 = arith.constant 0 : index
    %0 = vector.load %arg1[%c0, %c0_0] : memref<256x32xf32, #tpu.memory_space<vmem>>, vector<256x32xf32>
    %1 = arith.truncf %0 : vector<256x32xf32> to vector<256x32xbf16>
    %c0_1 = arith.constant 0 : index
    %c0_2 = arith.constant 0 : index
    %2 = vector.load %arg2[%c0_1, %c0_2] : memref<32x64xbf16, #tpu.memory_space<vmem>>, vector<32x64xbf16>
    %cst = arith.constant dense<0.000000e+00> : vector<256x64xf32>
    %3 = tpu.matmul %1, %2, %cst {dimension_numbers = #tpu.dot_dimension_numbers<[1], [0], [0], [1], [0, 0, 1, 1], [], []>} : vector<256x32xbf16>, vector<32x64xbf16>, vector<256x64xf32> -> vector<256x64xf32>
    %c0_3 = arith.constant 0 : index
    %c0_4 = arith.constant 0 : index
    %4 = vector.load %arg3[%c0_3, %c0_4] : memref<1x64xf32, #tpu.memory_space<vmem>>, vector<1x64xf32>
    %5 = vector.broadcast %4 : vector<1x64xf32> to vector<256x64xf32>
    %6 = arith.addf %3, %5 : vector<256x64xf32>
    %cst_5 = arith.constant 0.000000e+00 : f32
    %7 = vector.broadcast %cst_5 : f32 to vector<256x64xf32>
    %8 = arith.maximumf %6, %7 : vector<256x64xf32>
    %9 = arith.truncf %8 : vector<256x64xf32> to vector<256x64xbf16>
    %c0_6 = arith.constant 0 : index
    %c0_7 = arith.constant 0 : index
    %10 = vector.load %arg4[%c0_6, %c0_7] : memref<64x64xbf16, #tpu.memory_space<vmem>>, vector<64x64xbf16>
    %cst_8 = arith.constant dense<0.000000e+00> : vector<256x64xf32>
    %11 = tpu.matmul %9, %10, %cst_8 {dimension_numbers = #tpu.dot_dimension_numbers<[1], [0], [0], [1], [0, 0, 1, 1], [], []>} : vector<256x64xbf16>, vector<64x64xbf16>, vector<256x64xf32> -> vector<256x64xf32>
    %c0_9 = arith.constant 0 : index
    %c0_10 = arith.constant 0 : index
    %12 = vector.load %arg5[%c0_9, %c0_10] : memref<1x64xf32, #tpu.memory_space<vmem>>, vector<1x64xf32>
    %13 = vector.broadcast %12 : vector<1x64xf32> to vector<256x64xf32>
    %14 = arith.addf %11, %13 : vector<256x64xf32>
    %cst_11 = arith.constant 0.000000e+00 : f32
    %15 = vector.broadcast %cst_11 : f32 to vector<256x64xf32>
    %16 = arith.maximumf %14, %15 : vector<256x64xf32>
    %17 = arith.truncf %16 : vector<256x64xf32> to vector<256x64xbf16>
    %c0_12 = arith.constant 0 : index
    %c0_13 = arith.constant 0 : index
    %18 = vector.load %arg6[%c0_12, %c0_13] : memref<64x16xbf16, #tpu.memory_space<vmem>>, vector<64x16xbf16>
    %cst_14 = arith.constant dense<0.000000e+00> : vector<256x16xf32>
    %19 = tpu.matmul %17, %18, %cst_14 {dimension_numbers = #tpu.dot_dimension_numbers<[1], [0], [0], [1], [0, 0, 1, 1], [], []>} : vector<256x64xbf16>, vector<64x16xbf16>, vector<256x16xf32> -> vector<256x16xf32>
    %c0_15 = arith.constant 0 : index
    %c0_16 = arith.constant 0 : index
    %20 = vector.load %arg7[%c0_15, %c0_16] : memref<1x16xf32, #tpu.memory_space<vmem>>, vector<1x16xf32>
    %21 = vector.broadcast %20 : vector<1x16xf32> to vector<256x16xf32>
    %22 = arith.addf %19, %21 : vector<256x16xf32>
    %c0_17 = arith.constant 0 : index
    %c0_18 = arith.constant 0 : index
    %23 = vector.load %arg8[%c0_17, %c0_18] : memref<256x16xf32, #tpu.memory_space<vmem>>, vector<256x16xf32>
    tpu.vector_store %arg8[%c0_17, %c0_18], %22 {strides = array<i32>} : memref<256x16xf32, #tpu.memory_space<vmem>>, vector<256x16xf32>,
    return
  }
  func.func @transform_0(%arg0: i32) -> (i32, i32) {
    %c0_i32 = arith.constant 0 : i32
    %c0_i32_0 = arith.constant 0 : i32
    return %arg0, %c0_i32 : i32, i32
  }
  func.func @transform_1(%arg0: i32) -> (i32, i32) {
    %c0_i32 = arith.constant 0 : i32
    %c0_i32_0 = arith.constant 0 : i32
    %c0_i32_1 = arith.constant 0 : i32
    return %c0_i32, %c0_i32_0 : i32, i32
  }
  func.func @transform_2(%arg0: i32) -> (i32, i32) {
    %c0_i32 = arith.constant 0 : i32
    %c0_i32_0 = arith.constant 0 : i32
    %c0_i32_1 = arith.constant 0 : i32
    return %c0_i32, %c0_i32_0 : i32, i32
  }
  func.func @transform_3(%arg0: i32) -> (i32, i32) {
    %c0_i32 = arith.constant 0 : i32
    %c0_i32_0 = arith.constant 0 : i32
    %c0_i32_1 = arith.constant 0 : i32
    return %c0_i32, %c0_i32_0 : i32, i32
  }
  func.func @transform_4(%arg0: i32) -> (i32, i32) {
    %c0_i32 = arith.constant 0 : i32
    %c0_i32_0 = arith.constant 0 : i32
    %c0_i32_1 = arith.constant 0 : i32
    return %c0_i32, %c0_i32_0 : i32, i32
  }
  func.func @transform_5(%arg0: i32) -> (i32, i32) {
    %c0_i32 = arith.constant 0 : i32
    %c0_i32_0 = arith.constant 0 : i32
    %c0_i32_1 = arith.constant 0 : i32
    return %c0_i32, %c0_i32_0 : i32, i32
  }
  func.func @transform_6(%arg0: i32) -> (i32, i32) {
    %c0_i32 = arith.constant 0 : i32
    %c0_i32_0 = arith.constant 0 : i32
    %c0_i32_1 = arith.constant 0 : i32
    return %c0_i32, %c0_i32_0 : i32, i32
  }
  func.func @transform_7(%arg0: i32) -> (i32, i32) {
    %c0_i32 = arith.constant 0 : i32
    %c0_i32_0 = arith.constant 0 : i32
    return %arg0, %c0_i32 : i32, i32
  }
}

</mosaic_0001>

<bundles_post_ra>
// kernel: dnn_forward.1
= control target key start
LH: loop header
LB: loop body
LE: loop exit
PB: predicated region body
PF: predicated region fallthrough
CT: control target
= control target key end

     0   :  { %s1562_s24 = smov 0   ;;  %s1881_s0 = inlined_call_operand.vmem [shape: f32[512,32], index: 0, kind: input, shape index: {}]   ;;  %s1882_s1 = inlined_call_operand.vmem [shape: bf16[32,64], index: 1, kind: input, shape index: {}]   ;;  %s1883_s2 = inlined_call_operand.vmem [shape: f32[1,64], index: 2, kind: input, shape index: {}]   ;;  %s1884_s3 = inlined_call_operand.vmem [shape: bf16[64,64], index: 3, kind: input, shape index: {}]   ;;  %s1885_s4 = inlined_call_operand.vmem [shape: f32[1,64], index: 4, kind: input, shape index: {}]   ;;  %s1886_s5 = inlined_call_operand.vmem [shape: bf16[64,16], index: 5, kind: input, shape index: {}]   ;;  %s1887_s6 = inlined_call_operand.vmem [shape: f32[1,16], index: 6, kind: input, shape index: {}]   ;;  %s1888_s7 = inlined_call_operand.vmem [shape: f32[512,16], index: 7, kind: output, shape index: {}]  }
   0x1 LB: > { %s1246_s25 = sadd.s32 4294967295, %s1520_s24   ;;  %p1250_p0 = scmp.ge.s32.totalorder %s1520_s24, 1  ;;  %s1520_s24 = sphi %s1562_s24, %s17_s24  }
   0x2   : > { %p238_p1 = scmp.lt.s32.totalorder %s1520_s24, 3 }
   0x4   : > { %p239_p2 = pnand %p1250_p0, %p238_p1 }
   0x5   : > { %v1504_v0 = vld [vmem:[%s1882_s1] sm:$0xff] (!%p239_p2)   ;;  %s1251_s28 = sshll.u32 (!%p239_p2), %s1246_s25, 5  ;;  %v1505_v1 = vld [vmem:[%s1882_s1 + $0x8] sm:$0xff] (!%p239_p2)   ;;  %vm354_vm0 = vcmask (!%p239_p2), 261120   ;;  %v1508_v30 = vld [vmem:[%s1884_s3 + $0x10] sm:$0xff] (!%p239_p2)   ;;  %vm651_vm1 = vcmask (!%p239_p2), 523264  }
   0x6   : > { %242 = sbr.rel (%p239_p2) target bundleno = 738 (0x2e2), region = 48  ;;  %p271_p3 = scmp.lt.s32.totalorder (!%p239_p2), %s1251_s28, 63  ;;  %1376 = vmatprep.subr.bf16.mxu0 (!%p239_p2), %v1504_v0  ;;  %1492 = vmatprep.subr.bf16.mxu1 (!%p239_p2), %v1504_v0  ;;  %v1506_v2 = vld [vmem:[%s1884_s3] sm:$0xff] (!%p239_p2)   ;;  %v1507_v24 = vld [vmem:[%s1884_s3 + $0x8] sm:$0xff] (!%p239_p2)   ;;  %v1509_v53 = vld [vmem:[%s1884_s3 + $0x18] sm:$0xff] (!%p239_p2)   ;;  %vm1157_vm2 = vcmask (!%p239_p2), 130048  }
   0x7   : > { %1377 = vmatpush3.bf16.msra.mxu0 (!%p239_p2), %v1504_v0  ;;  %1494 = vmatpush3.bf16.msra.mxu1 (!%p239_p2), %v1504_v0  ;;  %v1510_v54 = vld [vmem:[%s1886_s5] sm:$0xff] (!%p239_p2)   ;;  %v1511_v55 = vld [vmem:[%s1886_s5 + $0x8] sm:$0xff] (!%p239_p2)   ;;  %v1512_v56 = vld [vmem:[%s1886_s5 + $0x10] sm:$0xff] (!%p239_p2)  }
   0x8   : > { %1378 = vmatprep.subr.bf16.mxu0 (!%p239_p2), %v1505_v1  ;;  %1493 = vmatprep.subr.bf16.mxu1 (!%p239_p2), %v1505_v1  ;;  %v1658_v57 = vld [vmem:[%s1883_s2] ss:$0 sm:$0xff] (!%p239_p2) }
   0xb   : > { %1379 = vmatpush3.bf16.msra.mxu0 (!%p239_p2), %v1505_v1  ;;  %1495 = vmatpush3.bf16.msra.mxu1 (!%p239_p2), %v1505_v1 }
   0xc   : > { %1412 = vmatprep.subr.bf16.mxu1 (!%p239_p2), %v1506_v2  ;;  %1452 = vmatprep.subr.bf16.mxu0 (!%p239_p2), %v1510_v54 }
   0xd   : > { %s1890_s28 = smov (!%p271_p3, %s1251_s28), 63 }
   0xe   : > { %s1252_s10 = sshll.u32 %s1890_s28, 3 }
   0xf   : > { %s1587_s13 = scalar_lea.vmem %s1881_s0, %s1252_s10  ;;  %s1780_s16 = scalar_lea.vmem %s1888_s7, %s1252_s10 }
  0x10   : > { %v283_v3 = vld [vmem:[%s1587_s13] sm:$0xff]  ;;  %v284_v4 = vld [vmem:[%s1587_s13 + $0x8] sm:$0xff]  ;;  %v285_v5 = vld [vmem:[%s1587_s13 + $0x10] sm:$0xff] }
  0x11   : > { %v315_v6 = vpack.c.bf16 %v284_v4, %v283_v3  ;;  %v286_v7 = vld [vmem:[%s1587_s13 + $0x18] sm:$0xff]  ;;  %v287_v8 = vld [vmem:[%s1587_s13 + $0x20] sm:$0xff]  ;;  %v288_v9 = vld [vmem:[%s1587_s13 + $0x28] sm:$0xff] }
  0x12   : > { %v316_v10 = vpack.c.bf16 %v286_v7, %v285_v5  ;;  %v317_v11 = vpack.c.bf16 %v288_v9, %v287_v8  ;;  %v289_v12 = vld [vmem:[%s1587_s13 + $0x30] sm:$0xff]  ;;  %v290_v13 = vld [vmem:[%s1587_s13 + $0x38] sm:$0xff]  ;;  %v291_v14 = vld [vmem:[%s1587_s13 + $0x40] sm:$0xff] }
  0x13   : > { %1380 = vmatprep.mubr.msk.bf16.mxu0 %vm354_vm0, %v315_v6  ;;  %v292_v15 = vld [vmem:[%s1587_s13 + $0x48] sm:$0xff]  ;;  %v299_v16 = vld [vmem:[%s1587_s13 + $0x80] sm:$0xff]  ;;  %v301_v19 = vld [vmem:[%s1587_s13 + $0x90] sm:$0xff]  ;;  %v318_v25 = vpack.c.bf16 %v290_v13, %v289_v12 }
  0x14   : > { %1381 = vmatmul.mubr.msk.bf16.vlgmr.msra.gmra.mrb[0].mxu0 %vm354_vm0, %v316_v10  ;;  %v300_v17 = vld [vmem:[%s1587_s13 + $0x88] sm:$0xff]  ;;  %v302_v20 = vld [vmem:[%s1587_s13 + $0x98] sm:$0xff]  ;;  %v303_v21 = vld [vmem:[%s1587_s13 + $0xa0] sm:$0xff]  ;;  %v319_v27 = vpack.c.bf16 %v292_v15, %v291_v14 }
  0x15   : > { %1384 = vmatprep.mubr.msk.bf16.mxu0 %vm354_vm0, %v317_v11  ;;  %v323_v18 = vpack.c.bf16 %v300_v17, %v299_v16  ;;  %v324_v22 = vpack.c.bf16 %v302_v20, %v301_v19  ;;  %v304_v23 = vld [vmem:[%s1587_s13 + $0xa8] sm:$0xff]  ;;  %v305_v28 = vld [vmem:[%s1587_s13 + $0xb0] sm:$0xff]  ;;  %v306_v29 = vld [vmem:[%s1587_s13 + $0xb8] sm:$0xff]  ;;  %1453 = vmatpush3.bf16.msra.mxu0 %v1510_v54 }
  0x16   : > { %v325_v26 = vpack.c.bf16 %v304_v23, %v303_v21  ;;  %v307_v31 = vld [vmem:[%s1587_s13 + $0xc0] sm:$0xff]  ;;  %v308_v32 = vld [vmem:[%s1587_s13 + $0xc8] sm:$0xff]  ;;  %v293_v33 = vld [vmem:[%s1587_s13 + $0x50] sm:$0xff]  ;;  %v326_v35 = vpack.c.bf16 %v306_v29, %v305_v28  ;;  %1454 = vmatprep.subr.bf16.mxu0 %v1511_v55 }
  0x17   : > { %1396 = vmatprep.mubr.msk.bf16.mxu1 %vm354_vm0, %v323_v18  ;;  %v294_v34 = vld [vmem:[%s1587_s13 + $0x58] sm:$0xff]  ;;  %v295_v36 = vld [vmem:[%s1587_s13 + $0x60] sm:$0xff]  ;;  %v296_v37 = vld [vmem:[%s1587_s13 + $0x68] sm:$0xff]  ;;  %v327_v38 = vpack.c.bf16 %v308_v32, %v307_v31 }
  0x18   : > { %1397 = vmatmul.mubr.msk.bf16.vlgmr.msra.gmra.mrb[0].mxu1 %vm354_vm0, %v324_v22  ;;  %v320_v39 = vpack.c.bf16 %v294_v34, %v293_v33  ;;  %v321_v40 = vpack.c.bf16 %v296_v37, %v295_v36  ;;  %v309_v41 = vld [vmem:[%s1587_s13 + $0xd0] sm:$0xff]  ;;  %v310_v42 = vld [vmem:[%s1587_s13 + $0xd8] sm:$0xff]  ;;  %v311_v43 = vld [vmem:[%s1587_s13 + $0xe0] sm:$0xff] }
  0x19   : > { %1400 = vmatprep.mubr.msk.bf16.mxu1 %vm354_vm0, %v325_v26  ;;  %1413 = vmatpush3.bf16.msra.mxu1 %v1506_v2  ;;  %v312_v44 = vld [vmem:[%s1587_s13 + $0xe8] sm:$0xff]  ;;  %v297_v45 = vld [vmem:[%s1587_s13 + $0x70] sm:$0xff]  ;;  %v298_v46 = vld [vmem:[%s1587_s13 + $0x78] sm:$0xff]  ;;  %v328_v47 = vpack.c.bf16 %v310_v42, %v309_v41 }
  0x1a   : > { %1414 = vmatprep.subr.bf16.mxu1 %v1507_v24  ;;  %v329_v48 = vpack.c.bf16 %v312_v44, %v311_v43  ;;  %v322_v49 = vpack.c.bf16 %v298_v46, %v297_v45  ;;  %v313_v50 = vld [vmem:[%s1587_s13 + $0xf0] sm:$0xff]  ;;  %v314_v51 = vld [vmem:[%s1587_s13 + $0xf8] sm:$0xff]  ;;  %1455 = vmatpush3.bf16.msra.mxu0 %v1511_v55 }
  0x1b   : > { %v330_v52 = vpack.c.bf16 %v314_v51, %v313_v50  ;;  %1456 = vmatprep.subr.bf16.mxu0 %v1512_v56 }
  0x1c   : > { %1385 = vmatmul.mubr.msk.bf16.gmra.mrb[4].mxu0 %vm354_vm0, %v318_v25 }
  0x1d   : > { %1388 = vmatprep.mubr.msk.bf16.mxu0 %vm354_vm0, %v319_v27  ;;  %1415 = vmatpush3.bf16.msra.mxu1 %v1507_v24 }
  0x1e   : > { %1416 = vmatprep.subr.bf16.mxu1 %v1508_v30  ;;  %1457 = vmatpush3.bf16.msra.mxu0 %v1512_v56 }
  0x20   : > { %1401 = vmatmul.mubr.msk.bf16.gmra.mrb[4].mxu1 %vm354_vm0, %v326_v35 }
  0x21   : > { %1404 = vmatprep.mubr.msk.bf16.mxu1 %vm354_vm0, %v327_v38  ;;  %1417 = vmatpush3.bf16.msra.mxu1 %v1508_v30 }
  0x22   : > { %1418 = vmatprep.subr.bf16.mxu1 %v1509_v53 }
  0x24   : > { %1389 = vmatmul.mubr.msk.bf16.gmra.mrb[8].mxu0 %vm354_vm0, %v320_v39 }
  0x25   : > { %1392 = vmatprep.mubr.msk.bf16.mxu0 %vm354_vm0, %v321_v40  ;;  %1419 = vmatpush3.bf16.msra.mxu1 %v1509_v53 }
  0x28   : > { %1405 = vmatmul.mubr.msk.bf16.gmra.mrb[8].mxu1 %vm354_vm0, %v328_v47 }
  0x29   : > { %1408 = vmatprep.mubr.msk.bf16.mxu1 %vm354_vm0, %v329_v48 }
  0x2c   : > { %1393 = vmatmul.mubr.msk.bf16.gmra.mrb[12].mxu0 %vm354_vm0, %v322_v49 }
  0x30   : > { %1409 = vmatmul.mubr.msk.bf16.gmra.mrb[12].mxu1 %vm354_vm0, %v330_v52 }
  0xe7   : > { %v1382_v58 = vpop.f32.mrb[0].mxu0 }
  0xe8   : > { %v446_v59 = vadd.f32 %v1382_v58, %v1658_v57  ;;  %v437_v60 = vpop.f32.mrb[1].mxu0 }
  0xe9   : > { %v438_v61 = vadd.f32 %v1658_v57, %v437_v60  ;;  %v1383_v62 = vpop.f32.mrb[2].mxu0 }
  0xea   : > { %v449_v63 = vadd.f32 %v1383_v62, %v1658_v57  ;;  %v440_v0 = vpop.f32.mrb[3].mxu0  ;;  %v566_v2 = vmax.f32 %v446_v59, 0.0 }
  0xeb   : > { %v441_v1 = vadd.f32 %v1658_v57, %v440_v0  ;;  %v1398_v4 = vpop.f32.mrb[0].mxu1  ;;  %v564_v5 = vmax.f32 %v438_v61, 0.0 }
  0xec   : > { %v567_v3 = vmax.f32 %v449_v63, 0.0  ;;  %v510_v7 = vadd.f32 %v1398_v4, %v1658_v57  ;;  %v501_v8 = vpop.f32.mrb[1].mxu1 }
  0xed   : > { %v565_v6 = vmax.f32 %v441_v1, 0.0  ;;  %v502_v10 = vadd.f32 %v1658_v57, %v501_v8  ;;  %v1399_v11 = vpop.f32.mrb[2].mxu1 }
  0xee   : > { %v597_v9 = vpack.c.bf16 %v567_v3, %v566_v2  ;;  %v582_v14 = vmax.f32 %v510_v7, 0.0  ;;  %v513_v15 = vadd.f32 %v1399_v11, %v1658_v57  ;;  %v504_v16 = vpop.f32.mrb[3].mxu1 }
  0xef   : > { %v596_v12 = vpack.c.bf16 %v565_v6, %v564_v5  ;;  %v1386_v13 = vpop.f32.mrb[4].mxu0  ;;  %v580_v19 = vmax.f32 %v502_v10, 0.0  ;;  %v505_v20 = vadd.f32 %v1658_v57, %v504_v16 }
  0xf0   : > { %v462_v17 = vadd.f32 %v1386_v13, %v1658_v57  ;;  %v453_v18 = vpop.f32.mrb[5].mxu0  ;;  %v583_v23 = vmax.f32 %v513_v15, 0.0 }
  0xf1   : > { %v454_v21 = vadd.f32 %v1658_v57, %v453_v18  ;;  %v1387_v22 = vpop.f32.mrb[6].mxu0  ;;  %1420 = vmatprep.mubr.msk.bf16.mxu1 %vm651_vm1, %v596_v12  ;;  %v581_v26 = vmax.f32 %v505_v20, 0.0 }
  0xf2   : > { %v465_v24 = vadd.f32 %v1387_v22, %v1658_v57  ;;  %v456_v25 = vpop.f32.mrb[7].mxu0  ;;  %1421 = vmatmul.mubr.msk.bf16.vlgmr.msra.gmra.mrb[16].mxu1 %vm651_vm1, %v597_v9  ;;  %v1674_v28 = vpack.c.bf16 %v583_v23, %v582_v14  ;;  %v570_v29 = vmax.f32 %v462_v17, 0.0 }
  0xf3   : > { %v457_v27 = vadd.f32 %v1658_v57, %v456_v25  ;;  %v1676_v31 = vpack.c.bf16 %v581_v26, %v580_v19  ;;  %v1402_v32 = vpop.f32.mrb[4].mxu1  ;;  %v568_v33 = vmax.f32 %v454_v21, 0.0 }
  0xf4   : > { %v571_v30 = vmax.f32 %v465_v24, 0.0  ;;  %v526_v35 = vadd.f32 %v1402_v32, %v1658_v57  ;;  %v517_v36 = vpop.f32.mrb[5].mxu1 }
  0xf5   : > { %v569_v34 = vmax.f32 %v457_v27, 0.0  ;;  %v518_v38 = vadd.f32 %v1658_v57, %v517_v36  ;;  %v1403_v39 = vpop.f32.mrb[6].mxu1 }
  0xf6   : > { %v599_v37 = vpack.c.bf16 %v571_v30, %v570_v29  ;;  %v586_v42 = vmax.f32 %v526_v35, 0.0  ;;  %v529_v43 = vadd.f32 %v1403_v39, %v1658_v57  ;;  %v520_v44 = vpop.f32.mrb[7].mxu1 }
  0xf7   : > { %v598_v40 = vpack.c.bf16 %v569_v34, %v568_v33  ;;  %v1390_v41 = vpop.f32.mrb[8].mxu0  ;;  %v584_v47 = vmax.f32 %v518_v38, 0.0  ;;  %v521_v48 = vadd.f32 %v1658_v57, %v520_v44 }
  0xf8   : > { %v478_v45 = vadd.f32 %v1390_v41, %v1658_v57  ;;  %v469_v46 = vpop.f32.mrb[9].mxu0  ;;  %v587_v51 = vmax.f32 %v529_v43, 0.0 }
  0xf9   : > { %v470_v49 = vadd.f32 %v1658_v57, %v469_v46  ;;  %v1391_v50 = vpop.f32.mrb[10].mxu0  ;;  %1424 = vmatprep.mubr.msk.bf16.mxu1 %vm651_vm1, %v598_v40  ;;  %v585_v54 = vmax.f32 %v521_v48, 0.0 }
  0xfa   : > { %v481_v52 = vadd.f32 %v1391_v50, %v1658_v57  ;;  %v472_v53 = vpop.f32.mrb[11].mxu0  ;;  %1425 = vmatmul.mubr.msk.bf16.gmra.mrb[20].mxu1 %vm651_vm1, %v599_v37  ;;  %v607_v56 = vpack.c.bf16 %v587_v51, %v586_v42  ;;  %v574_v58 = vmax.f32 %v478_v45, 0.0 }
  0xfb   : > { %v473_v55 = vadd.f32 %v1658_v57, %v472_v53  ;;  %v606_v60 = vpack.c.bf16 %v585_v54, %v584_v47  ;;  %v1406_v61 = vpop.f32.mrb[8].mxu1  ;;  %v572_v62 = vmax.f32 %v470_v49, 0.0 }
  0xfc   : > { %v575_v59 = vmax.f32 %v481_v52, 0.0  ;;  %v542_v0 = vadd.f32 %v1406_v61, %v1658_v57  ;;  %v533_v1 = vpop.f32.mrb[9].mxu1 }
  0xfd   : > { %v573_v63 = vmax.f32 %v473_v55, 0.0  ;;  %v534_v3 = vadd.f32 %v1658_v57, %v533_v1  ;;  %v1407_v4 = vpop.f32.mrb[10].mxu1 }
  0xfe   : > { %v601_v2 = vpack.c.bf16 %v575_v59, %v574_v58  ;;  %v590_v7 = vmax.f32 %v542_v0, 0.0  ;;  %v545_v8 = vadd.f32 %v1407_v4, %v1658_v57  ;;  %v536_v9 = vpop.f32.mrb[11].mxu1 }
  0xff   : > { %v600_v5 = vpack.c.bf16 %v573_v63, %v572_v62  ;;  %v1394_v6 = vpop.f32.mrb[12].mxu0  ;;  %v588_v12 = vmax.f32 %v534_v3, 0.0  ;;  %v537_v13 = vadd.f32 %v1658_v57, %v536_v9 }
 0x100   : > { %v494_v10 = vadd.f32 %v1394_v6, %v1658_v57  ;;  %v485_v11 = vpop.f32.mrb[13].mxu0  ;;  %v591_v16 = vmax.f32 %v545_v8, 0.0 }
 0x101   : > { %v486_v14 = vadd.f32 %v1658_v57, %v485_v11  ;;  %v1395_v15 = vpop.f32.mrb[14].mxu0  ;;  %1428 = vmatprep.mubr.msk.bf16.mxu1 %vm651_vm1, %v600_v5  ;;  %v589_v19 = vmax.f32 %v537_v13, 0.0 }
 0x102   : > { %v497_v17 = vadd.f32 %v1395_v15, %v1658_v57  ;;  %v488_v18 = vpop.f32.mrb[15].mxu0  ;;  %1429 = vmatmul.mubr.msk.bf16.gmra.mrb[24].mxu1 %vm651_vm1, %v601_v2  ;;  %v609_v21 = vpack.c.bf16 %v591_v16, %v590_v7  ;;  %v578_v22 = vmax.f32 %v494_v10, 0.0 }
 0x103   : > { %v489_v20 = vadd.f32 %v1658_v57, %v488_v18  ;;  %v608_v24 = vpack.c.bf16 %v589_v19, %v588_v12  ;;  %v1410_v25 = vpop.f32.mrb[12].mxu1  ;;  %v576_v26 = vmax.f32 %v486_v14, 0.0 }
 0x104   : > { %v579_v23 = vmax.f32 %v497_v17, 0.0  ;;  %v558_v29 = vadd.f32 %v1410_v25, %v1658_v57  ;;  %v549_v30 = vpop.f32.mrb[13].mxu1 }
 0x105   : > { %v577_v27 = vmax.f32 %v489_v20, 0.0  ;;  %v550_v33 = vadd.f32 %v1658_v57, %v549_v30  ;;  %v1411_v34 = vpop.f32.mrb[14].mxu1 }
 0x106   : > { %v603_v32 = vpack.c.bf16 %v579_v23, %v578_v22  ;;  %v594_v36 = vmax.f32 %v558_v29, 0.0  ;;  %v561_v37 = vadd.f32 %v1411_v34, %v1658_v57  ;;  %v552_v38 = vpop.f32.mrb[15].mxu1 }
 0x107   : > { %v602_v35 = vpack.c.bf16 %v577_v27, %v576_v26  ;;  %v592_v39 = vmax.f32 %v550_v33, 0.0  ;;  %v553_v40 = vadd.f32 %v1658_v57, %v552_v38  ;;  %v1513_v57 = vld [vmem:[%s1886_s5 + $0x18] sm:$0xff]  }
 0x108   : > { %v595_v41 = vmax.f32 %v561_v37, 0.0  ;;  %1458 = vmatprep.subr.bf16.mxu0 %v1513_v57 }
 0x109   : > { %1432 = vmatprep.mubr.msk.bf16.mxu1 %vm651_vm1, %v602_v35  ;;  %v593_v42 = vmax.f32 %v553_v40, 0.0  ;;  %1459 = vmatpush3.bf16.msra.mxu0 %v1513_v57 }
 0x10a   : > { %1433 = vmatmul.mubr.msk.bf16.gmra.mrb[28].mxu1 %vm651_vm1, %v603_v32  ;;  %v611_v43 = vpack.c.bf16 %v595_v41, %v594_v36 }
 0x10b   : > { %1436 = vmatprep.mubr.msk.bf16.mxu1 %vm651_vm1, %v1676_v31  ;;  %v610_v44 = vpack.c.bf16 %v593_v42, %v592_v39 }
 0x112   : > { %1437 = vmatmul.mubr.msk.bf16.gmra.mrb[32].mxu1 %vm651_vm1, %v1674_v28  ;;  %v1720_v28 = vld [vmem:[%s1885_s4] ss:$0 sm:$0xff] }
 0x113   : > { %1440 = vmatprep.mubr.msk.bf16.mxu1 %vm651_vm1, %v606_v60 }
 0x11a   : > { %1441 = vmatmul.mubr.msk.bf16.gmra.mrb[36].mxu1 %vm651_vm1, %v607_v56 }
 0x11b   : > { %1444 = vmatprep.mubr.msk.bf16.mxu1 %vm651_vm1, %v608_v24 }
 0x122   : > { %1445 = vmatmul.mubr.msk.bf16.gmra.mrb[40].mxu1 %vm651_vm1, %v609_v21 }
 0x123   : > { %1448 = vmatprep.mubr.msk.bf16.mxu1 %vm651_vm1, %v610_v44 }
 0x12a   : > { %1449 = vmatmul.mubr.msk.bf16.gmra.mrb[44].mxu1 %vm651_vm1, %v611_v43 }
 0x1c5   : > { %v1422_v31 = vpop.f32.mrb[16].mxu1 }
 0x1c6   : > { %v743_v45 = vadd.f32 %v1422_v31, %v1720_v28  ;;  %v734_v46 = vpop.f32.mrb[17].mxu1 }
 0x1c7   : > { %v735_v47 = vadd.f32 %v1720_v28, %v734_v46  ;;  %v1423_v48 = vpop.f32.mrb[18].mxu1 }
 0x1c8   : > { %v746_v49 = vadd.f32 %v1423_v48, %v1720_v28  ;;  %v737_v50 = vpop.f32.mrb[19].mxu1  ;;  %v863_v52 = vmax.f32 %v743_v45, 0.0 }
 0x1c9   : > { %v738_v51 = vadd.f32 %v1720_v28, %v737_v50  ;;  %v861_v54 = vmax.f32 %v735_v47, 0.0 }
 0x1ca   : > { %v864_v53 = vmax.f32 %v746_v49, 0.0 }
 0x1cb   : > { %v862_v55 = vmax.f32 %v738_v51, 0.0 }
 0x1cc   : > { %v894_v56 = vpack.c.bf16 %v864_v53, %v863_v52 }
 0x1cd   : > { %v893_v58 = vpack.c.bf16 %v862_v55, %v861_v54  ;;  %v1426_v59 = vpop.f32.mrb[20].mxu1 }
 0x1ce   : > { %v759_v60 = vadd.f32 %v1426_v59, %v1720_v28  ;;  %v750_v61 = vpop.f32.mrb[21].mxu1 }
 0x1cf   : > { %v751_v62 = vadd.f32 %v1720_v28, %v750_v61  ;;  %v1427_v63 = vpop.f32.mrb[22].mxu1  ;;  %1460 = vmatprep.mubr.msk.bf16.mxu0 %vm651_vm1, %v893_v58 }
 0x1d0   : > { %v762_v0 = vadd.f32 %v1427_v63, %v1720_v28  ;;  %v753_v1 = vpop.f32.mrb[23].mxu1  ;;  %1461 = vmatmul.mubr.msk.bf16.vlgmr.msra.gmra.mrb[16].mxu0 %vm651_vm1, %v894_v56  ;;  %v867_v3 = vmax.f32 %v759_v60, 0.0 }
 0x1d1   : > { %v754_v2 = vadd.f32 %v1720_v28, %v753_v1  ;;  %v865_v5 = vmax.f32 %v751_v62, 0.0 }
 0x1d2   : > { %v868_v4 = vmax.f32 %v762_v0, 0.0 }
 0x1d3   : > { %v866_v6 = vmax.f32 %v754_v2, 0.0 }
 0x1d4   : > { %v896_v7 = vpack.c.bf16 %v868_v4, %v867_v3 }
 0x1d5   : > { %v895_v8 = vpack.c.bf16 %v866_v6, %v865_v5  ;;  %v1430_v9 = vpop.f32.mrb[24].mxu1 }
 0x1d6   : > { %v775_v10 = vadd.f32 %v1430_v9, %v1720_v28  ;;  %v766_v11 = vpop.f32.mrb[25].mxu1 }
 0x1d7   : > { %v767_v12 = vadd.f32 %v1720_v28, %v766_v11  ;;  %v1431_v13 = vpop.f32.mrb[26].mxu1  ;;  %1464 = vmatprep.mubr.msk.bf16.mxu0 %vm651_vm1, %v895_v8 }
 0x1d8   : > { %v778_v14 = vadd.f32 %v1431_v13, %v1720_v28  ;;  %v769_v15 = vpop.f32.mrb[27].mxu1  ;;  %1465 = vmatmul.mubr.msk.bf16.gmra.mrb[20].mxu0 %vm651_vm1, %v896_v7  ;;  %v871_v17 = vmax.f32 %v775_v10, 0.0 }
 0x1d9   : > { %v770_v16 = vadd.f32 %v1720_v28, %v769_v15  ;;  %v869_v19 = vmax.f32 %v767_v12, 0.0 }
 0x1da   : > { %v872_v18 = vmax.f32 %v778_v14, 0.0 }
 0x1db   : > { %v870_v20 = vmax.f32 %v770_v16, 0.0 }
 0x1dc   : > { %v898_v21 = vpack.c.bf16 %v872_v18, %v871_v17 }
 0x1dd   : > { %v897_v22 = vpack.c.bf16 %v870_v20, %v869_v19  ;;  %v1434_v23 = vpop.f32.mrb[28].mxu1 }
 0x1de   : > { %v791_v24 = vadd.f32 %v1434_v23, %v1720_v28  ;;  %v782_v25 = vpop.f32.mrb[29].mxu1 }
 0x1df   : > { %v783_v26 = vadd.f32 %v1720_v28, %v782_v25  ;;  %v1435_v27 = vpop.f32.mrb[30].mxu1  ;;  %1468 = vmatprep.mubr.msk.bf16.mxu0 %vm651_vm1, %v897_v22 }
 0x1e0   : > { %v794_v29 = vadd.f32 %v1435_v27, %v1720_v28  ;;  %v785_v30 = vpop.f32.mrb[31].mxu1  ;;  %1469 = vmatmul.mubr.msk.bf16.gmra.mrb[24].mxu0 %vm651_vm1, %v898_v21  ;;  %v875_v33 = vmax.f32 %v791_v24, 0.0 }
 0x1e1   : > { %v786_v32 = vadd.f32 %v1720_v28, %v785_v30  ;;  %v873_v35 = vmax.f32 %v783_v26, 0.0 }
 0x1e2   : > { %v876_v34 = vmax.f32 %v794_v29, 0.0 }
 0x1e3   : > { %v874_v36 = vmax.f32 %v786_v32, 0.0  ;;  %v1773_v32 = vld [vmem:[%s1887_s6] ss:$0 sm:$0xff] }
 0x1e4   : > { %v900_v37 = vpack.c.bf16 %v876_v34, %v875_v33 }
 0x1e5   : > { %v899_v38 = vpack.c.bf16 %v874_v36, %v873_v35  ;;  %v1438_v39 = vpop.f32.mrb[32].mxu1 }
 0x1e6   : > { %v807_v40 = vadd.f32 %v1438_v39, %v1720_v28  ;;  %v798_v41 = vpop.f32.mrb[33].mxu1 }
 0x1e7   : > { %v799_v42 = vadd.f32 %v1720_v28, %v798_v41  ;;  %v1439_v43 = vpop.f32.mrb[34].mxu1  ;;  %1472 = vmatprep.mubr.msk.bf16.mxu0 %vm651_vm1, %v899_v38 }
 0x1e8   : > { %v810_v44 = vadd.f32 %v1439_v43, %v1720_v28  ;;  %v801_v57 = vpop.f32.mrb[35].mxu1  ;;  %1473 = vmatmul.mubr.msk.bf16.gmra.mrb[28].mxu0 %vm651_vm1, %v900_v37  ;;  %v879_v45 = vmax.f32 %v807_v40, 0.0 }
 0x1e9   : > { %v802_v31 = vadd.f32 %v1720_v28, %v801_v57  ;;  %v877_v47 = vmax.f32 %v799_v42, 0.0 }
 0x1ea   : > { %v880_v46 = vmax.f32 %v810_v44, 0.0 }
 0x1eb   : > { %v878_v48 = vmax.f32 %v802_v31, 0.0 }
 0x1ec   : > { %v902_v49 = vpack.c.bf16 %v880_v46, %v879_v45 }
 0x1ed   : > { %v901_v50 = vpack.c.bf16 %v878_v48, %v877_v47  ;;  %v1442_v51 = vpop.f32.mrb[36].mxu1 }
 0x1ee   : > { %v823_v52 = vadd.f32 %v1442_v51, %v1720_v28  ;;  %v814_v53 = vpop.f32.mrb[37].mxu1 }
 0x1ef   : > { %v815_v54 = vadd.f32 %v1720_v28, %v814_v53  ;;  %v1443_v55 = vpop.f32.mrb[38].mxu1  ;;  %1476 = vmatprep.mubr.msk.bf16.mxu0 %vm651_vm1, %v901_v50 }
 0x1f0   : > { %v826_v56 = vadd.f32 %v1443_v55, %v1720_v28  ;;  %v817_v58 = vpop.f32.mrb[39].mxu1  ;;  %1477 = vmatmul.mubr.msk.bf16.gmra.mrb[32].mxu0 %vm651_vm1, %v902_v49  ;;  %v883_v60 = vmax.f32 %v823_v52, 0.0 }
 0x1f1   : > { %v818_v59 = vadd.f32 %v1720_v28, %v817_v58  ;;  %v881_v62 = vmax.f32 %v815_v54, 0.0 }
 0x1f2   : > { %v884_v61 = vmax.f32 %v826_v56, 0.0 }
 0x1f3   : > { %v882_v63 = vmax.f32 %v818_v59, 0.0 }
 0x1f4   : > { %v904_v0 = vpack.c.bf16 %v884_v61, %v883_v60 }
 0x1f5   : > { %v903_v1 = vpack.c.bf16 %v882_v63, %v881_v62  ;;  %v1446_v2 = vpop.f32.mrb[40].mxu1 }
 0x1f6   : > { %v839_v3 = vadd.f32 %v1446_v2, %v1720_v28  ;;  %v830_v4 = vpop.f32.mrb[41].mxu1 }
 0x1f7   : > { %v831_v5 = vadd.f32 %v1720_v28, %v830_v4  ;;  %v1447_v6 = vpop.f32.mrb[42].mxu1  ;;  %1480 = vmatprep.mubr.msk.bf16.mxu0 %vm651_vm1, %v903_v1 }
 0x1f8   : > { %v842_v7 = vadd.f32 %v1447_v6, %v1720_v28  ;;  %v833_v8 = vpop.f32.mrb[43].mxu1  ;;  %1481 = vmatmul.mubr.msk.bf16.gmra.mrb[36].mxu0 %vm651_vm1, %v904_v0  ;;  %v887_v10 = vmax.f32 %v839_v3, 0.0 }
 0x1f9   : > { %v834_v9 = vadd.f32 %v1720_v28, %v833_v8  ;;  %v885_v12 = vmax.f32 %v831_v5, 0.0 }
 0x1fa   : > { %v888_v11 = vmax.f32 %v842_v7, 0.0 }
 0x1fb   : > { %v886_v13 = vmax.f32 %v834_v9, 0.0 }
 0x1fc   : > { %v906_v14 = vpack.c.bf16 %v888_v11, %v887_v10 }
 0x1fd   : > { %v905_v15 = vpack.c.bf16 %v886_v13, %v885_v12  ;;  %v1450_v16 = vpop.f32.mrb[44].mxu1 }
 0x1fe   : > { %v855_v17 = vadd.f32 %v1450_v16, %v1720_v28  ;;  %v846_v18 = vpop.f32.mrb[45].mxu1 }
 0x1ff   : > { %v847_v19 = vadd.f32 %v1720_v28, %v846_v18  ;;  %v1451_v20 = vpop.f32.mrb[46].mxu1  ;;  %1484 = vmatprep.mubr.msk.bf16.mxu0 %vm651_vm1, %v905_v15 }
 0x200   : > { %v858_v21 = vadd.f32 %v1451_v20, %v1720_v28  ;;  %v849_v22 = vpop.f32.mrb[47].mxu1  ;;  %1485 = vmatmul.mubr.msk.bf16.gmra.mrb[40].mxu0 %vm651_vm1, %v906_v14  ;;  %v891_v24 = vmax.f32 %v855_v17, 0.0 }
 0x201   : > { %v850_v23 = vadd.f32 %v1720_v28, %v849_v22  ;;  %v889_v26 = vmax.f32 %v847_v19, 0.0 }
 0x202   : > { %v892_v25 = vmax.f32 %v858_v21, 0.0 }
 0x203   : > { %v890_v27 = vmax.f32 %v850_v23, 0.0 }
 0x204   : > { %v908_v29 = vpack.c.bf16 %v892_v25, %v891_v24 }
 0x205   : > { %v907_v30 = vpack.c.bf16 %v890_v27, %v889_v26 }
 0x207   : > { %1488 = vmatprep.mubr.msk.bf16.mxu0 %vm651_vm1, %v907_v30 }
 0x208   : > { %1489 = vmatmul.mubr.msk.bf16.gmra.mrb[44].mxu0 %vm651_vm1, %v908_v29 }
 0x2a3   : > { %v1462_v28 = vpop.f32.mrb[16].mxu0 }
 0x2a4   : > { %v1039_v33 = vadd.f32 %v1462_v28, %v1773_v32  ;;  %v1030_v34 = vpop.f32.mrb[17].mxu0 }
 0x2a5   : > { %v1031_v35 = vadd.f32 %v1773_v32, %v1030_v34  ;;  %v1463_v36 = vpop.f32.mrb[18].mxu0 }
 0x2a6   : > { %1160 = vst.msk [vmem:[%s1780_s16 + $0x10] sm:$0xff] %vm1157_vm2, %v1039_v33  ;;  %v1042_v37 = vadd.f32 %v1463_v36, %v1773_v32  ;;  %v1033_v38 = vpop.f32.mrb[19].mxu0 }
 0x2a7   : > { %1158 = vst.msk [vmem:[%s1780_s16] sm:$0xff] %vm1157_vm2, %v1031_v35  ;;  %v1034_v39 = vadd.f32 %v1773_v32, %v1033_v38 }
 0x2a8   : > { %1161 = vst.msk [vmem:[%s1780_s16 + $0x18] sm:$0xff] %vm1157_vm2, %v1042_v37 }
 0x2a9   : > { %1159 = vst.msk [vmem:[%s1780_s16 + $0x8] sm:$0xff] %vm1157_vm2, %v1034_v39 }
 0x2ab   : > { %v1466_v40 = vpop.f32.mrb[20].mxu0 }
 0x2ac   : > { %v1055_v41 = vadd.f32 %v1466_v40, %v1773_v32  ;;  %v1046_v42 = vpop.f32.mrb[21].mxu0 }
 0x2ad   : > { %v1047_v43 = vadd.f32 %v1773_v32, %v1046_v42  ;;  %v1467_v44 = vpop.f32.mrb[22].mxu0 }
 0x2ae   : > { %1164 = vst.msk [vmem:[%s1780_s16 + $0x30] sm:$0xff] %vm1157_vm2, %v1055_v41  ;;  %v1058_v57 = vadd.f32 %v1467_v44, %v1773_v32  ;;  %v1049_v31 = vpop.f32.mrb[23].mxu0 }
 0x2af   : > { %1162 = vst.msk [vmem:[%s1780_s16 + $0x20] sm:$0xff] %vm1157_vm2, %v1047_v43  ;;  %v1050_v45 = vadd.f32 %v1773_v32, %v1049_v31 }
 0x2b0   : > { %1165 = vst.msk [vmem:[%s1780_s16 + $0x38] sm:$0xff] %vm1157_vm2, %v1058_v57 }
 0x2b1   : > { %1163 = vst.msk [vmem:[%s1780_s16 + $0x28] sm:$0xff] %vm1157_vm2, %v1050_v45 }
 0x2b3   : > { %v1470_v46 = vpop.f32.mrb[24].mxu0 }
 0x2b4   : > { %v1071_v47 = vadd.f32 %v1470_v46, %v1773_v32  ;;  %v1062_v48 = vpop.f32.mrb[25].mxu0 }
 0x2b5   : > { %v1063_v49 = vadd.f32 %v1773_v32, %v1062_v48  ;;  %v1471_v50 = vpop.f32.mrb[26].mxu0 }
 0x2b6   : > { %1168 = vst.msk [vmem:[%s1780_s16 + $0x50] sm:$0xff] %vm1157_vm2, %v1071_v47  ;;  %v1074_v51 = vadd.f32 %v1471_v50, %v1773_v32  ;;  %v1065_v52 = vpop.f32.mrb[27].mxu0 }
 0x2b7   : > { %1166 = vst.msk [vmem:[%s1780_s16 + $0x40] sm:$0xff] %vm1157_vm2, %v1063_v49  ;;  %v1066_v53 = vadd.f32 %v1773_v32, %v1065_v52 }
 0x2b8   : > { %1169 = vst.msk [vmem:[%s1780_s16 + $0x58] sm:$0xff] %vm1157_vm2, %v1074_v51 }
 0x2b9   : > { %1167 = vst.msk [vmem:[%s1780_s16 + $0x48] sm:$0xff] %vm1157_vm2, %v1066_v53 }
 0x2bb   : > { %v1474_v54 = vpop.f32.mrb[28].mxu0 }
 0x2bc   : > { %v1087_v55 = vadd.f32 %v1474_v54, %v1773_v32  ;;  %v1078_v56 = vpop.f32.mrb[29].mxu0 }
 0x2bd   : > { %v1079_v58 = vadd.f32 %v1773_v32, %v1078_v56  ;;  %v1475_v59 = vpop.f32.mrb[30].mxu0 }
 0x2be   : > { %1172 = vst.msk [vmem:[%s1780_s16 + $0x70] sm:$0xff] %vm1157_vm2, %v1087_v55  ;;  %v1090_v60 = vadd.f32 %v1475_v59, %v1773_v32  ;;  %v1081_v61 = vpop.f32.mrb[31].mxu0 }
 0x2bf   : > { %1170 = vst.msk [vmem:[%s1780_s16 + $0x60] sm:$0xff] %vm1157_vm2, %v1079_v58  ;;  %v1082_v62 = vadd.f32 %v1773_v32, %v1081_v61 }
 0x2c0   : > { %1173 = vst.msk [vmem:[%s1780_s16 + $0x78] sm:$0xff] %vm1157_vm2, %v1090_v60 }
 0x2c1   : > { %1171 = vst.msk [vmem:[%s1780_s16 + $0x68] sm:$0xff] %vm1157_vm2, %v1082_v62 }
 0x2c3   : > { %v1478_v63 = vpop.f32.mrb[32].mxu0 }
 0x2c4   : > { %v1103_v0 = vadd.f32 %v1478_v63, %v1773_v32  ;;  %v1094_v1 = vpop.f32.mrb[33].mxu0 }
 0x2c5   : > { %v1095_v2 = vadd.f32 %v1773_v32, %v1094_v1  ;;  %v1479_v3 = vpop.f32.mrb[34].mxu0 }
 0x2c6   : > { %1176 = vst.msk [vmem:[%s1780_s16 + $0x90] sm:$0xff] %vm1157_vm2, %v1103_v0  ;;  %v1106_v4 = vadd.f32 %v1479_v3, %v1773_v32  ;;  %v1097_v5 = vpop.f32.mrb[35].mxu0 }
 0x2c7   : > { %1174 = vst.msk [vmem:[%s1780_s16 + $0x80] sm:$0xff] %vm1157_vm2, %v1095_v2  ;;  %v1098_v6 = vadd.f32 %v1773_v32, %v1097_v5 }
 0x2c8   : > { %1177 = vst.msk [vmem:[%s1780_s16 + $0x98] sm:$0xff] %vm1157_vm2, %v1106_v4 }
 0x2c9   : > { %1175 = vst.msk [vmem:[%s1780_s16 + $0x88] sm:$0xff] %vm1157_vm2, %v1098_v6 }
 0x2cb   : > { %v1482_v7 = vpop.f32.mrb[36].mxu0 }
 0x2cc   : > { %v1119_v8 = vadd.f32 %v1482_v7, %v1773_v32  ;;  %v1110_v9 = vpop.f32.mrb[37].mxu0 }
 0x2cd   : > { %v1111_v10 = vadd.f32 %v1773_v32, %v1110_v9  ;;  %v1483_v11 = vpop.f32.mrb[38].mxu0 }
 0x2ce   : > { %1180 = vst.msk [vmem:[%s1780_s16 + $0xb0] sm:$0xff] %vm1157_vm2, %v1119_v8  ;;  %v1122_v12 = vadd.f32 %v1483_v11, %v1773_v32  ;;  %v1113_v13 = vpop.f32.mrb[39].mxu0 }
 0x2cf   : > { %1178 = vst.msk [vmem:[%s1780_s16 + $0xa0] sm:$0xff] %vm1157_vm2, %v1111_v10  ;;  %v1114_v14 = vadd.f32 %v1773_v32, %v1113_v13 }
 0x2d0   : > { %1181 = vst.msk [vmem:[%s1780_s16 + $0xb8] sm:$0xff] %vm1157_vm2, %v1122_v12 }
 0x2d1   : > { %1179 = vst.msk [vmem:[%s1780_s16 + $0xa8] sm:$0xff] %vm1157_vm2, %v1114_v14 }
 0x2d3   : > { %v1486_v15 = vpop.f32.mrb[40].mxu0 }
 0x2d4   : > { %v1135_v16 = vadd.f32 %v1486_v15, %v1773_v32  ;;  %v1126_v17 = vpop.f32.mrb[41].mxu0 }
 0x2d5   : > { %v1127_v18 = vadd.f32 %v1773_v32, %v1126_v17  ;;  %v1487_v19 = vpop.f32.mrb[42].mxu0 }
 0x2d6   : > { %1184 = vst.msk [vmem:[%s1780_s16 + $0xd0] sm:$0xff] %vm1157_vm2, %v1135_v16  ;;  %v1138_v20 = vadd.f32 %v1487_v19, %v1773_v32  ;;  %v1129_v21 = vpop.f32.mrb[43].mxu0 }
 0x2d7   : > { %1182 = vst.msk [vmem:[%s1780_s16 + $0xc0] sm:$0xff] %vm1157_vm2, %v1127_v18  ;;  %v1130_v22 = vadd.f32 %v1773_v32, %v1129_v21 }
 0x2d8   : > { %1185 = vst.msk [vmem:[%s1780_s16 + $0xd8] sm:$0xff] %vm1157_vm2, %v1138_v20 }
 0x2d9   : > { %1183 = vst.msk [vmem:[%s1780_s16 + $0xc8] sm:$0xff] %vm1157_vm2, %v1130_v22 }
 0x2db   : > { %v1490_v23 = vpop.f32.mrb[44].mxu0 }
 0x2dc   : > { %v1151_v24 = vadd.f32 %v1490_v23, %v1773_v32  ;;  %v1142_v25 = vpop.f32.mrb[45].mxu0 }
 0x2dd   : > { %v1143_v26 = vadd.f32 %v1773_v32, %v1142_v25  ;;  %v1491_v27 = vpop.f32.mrb[46].mxu0 }
 0x2de   : > { %1188 = vst.msk [vmem:[%s1780_s16 + $0xf0] sm:$0xff] %vm1157_vm2, %v1151_v24  ;;  %v1154_v29 = vadd.f32 %v1491_v27, %v1773_v32  ;;  %v1145_v30 = vpop.f32.mrb[47].mxu0 }
 0x2df   : > { %1186 = vst.msk [vmem:[%s1780_s16 + $0xe0] sm:$0xff] %vm1157_vm2, %v1143_v26  ;;  %v1146_v28 = vadd.f32 %v1773_v32, %v1145_v30 }
 0x2e0   : > { %1189 = vst.msk [vmem:[%s1780_s16 + $0xf8] sm:$0xff] %vm1157_vm2, %v1154_v29 }
 0x2e1   : > { %1187 = vst.msk [vmem:[%s1780_s16 + $0xe8] sm:$0xff] %vm1157_vm2, %v1146_v28 }
 0x2e2 PF: > { %s17_s24 = sadd.s32 1, %s1520_s24  }
 0x2e3   : > { %p14_p4 = scmp.ge.s32.totalorder %s17_s24, 4  }
 0x2e5   :  { %16 = sbr.rel (!%p14_p4) target bundleno = 1 (0x1), region = 78 }

</bundles_post_ra>
